<compile_context>
chip_gen: v6e
topology: v6e:2x2x1
jax: 0.10.0
libtpu: 0.0.40
codegen_flags: <defaults>
</compile_context>

<pallas_src>
import functools

import numpy as np
import jax
import jax.numpy as jnp
from jax import lax
from jax.experimental import pallas as pl
from jax.experimental.pallas import tpu as pltpu

_TWO_PI = np.float32(2.0 * np.pi)


def _ceil_div(a, b):
    return -(-a // b)


def _logvar_kernel_whole(t_ref, params_ref, bias_ref, o_ref):
    """Small-B path: whole (1, B) row in one shot (no grid, no chunk loop)."""
    t = t_ref[...].astype(jnp.float32)                 # (1, B)   native->f32 on VPU
    f = params_ref[0]                                  # (C, 1)   2*pi pre-folded
    p = params_ref[1]                                  # (C, 1)   2*pi pre-folded
    w = params_ref[2]                                  # (C, 1)
    emb = jnp.cos(f * t + p)                           # (C, B)   EUP
    acc = jnp.sum(emb * w, axis=0, keepdims=True)      # (1, B)   VPU mul + XLU reduce
    o_ref[...] = (acc + bias_ref[0, 0]).astype(o_ref.dtype)


def _logvar_kernel_tiled(t_ref, params_ref, bias_ref, o_ref, *, chunk, num_chunks):
    """Tiled path: a (1, block_b) lane tile processed in `chunk`-lane sub-slices
    so the (C, chunk) f32 intermediate stays at ~16-32 vregs (no spills)."""
    f = params_ref[0]                                  # (C, 1)
    p = params_ref[1]                                  # (C, 1)
    w = params_ref[2]                                  # (C, 1)
    b = bias_ref[0, 0]

    def body(i, carry):
        start = pl.multiple_of(i * chunk, chunk)
        t = t_ref[:, pl.ds(start, chunk)].astype(jnp.float32)     # (1, chunk)
        emb = jnp.cos(f * t + p)                                  # (C, chunk)
        acc = jnp.sum(emb * w, axis=0, keepdims=True) + b         # (1, chunk)
        o_ref[:, pl.ds(start, chunk)] = acc.astype(o_ref.dtype)
        return carry

    lax.fori_loop(0, num_chunks, body, 0, unroll=num_chunks <= 8)


def logvar_net(t, freqs, phases, weight, bias, *,
               max_block_b=8192, small_b_threshold=512):
    """t: (B,) float. Returns (B, 1) in t.dtype. Matches LogvarNet.forward."""
    B = t.shape[0]
    C = freqs.shape[-1]
    out_dtype = t.dtype

    # Fold 2*pi into the tiny (1, C) buffers once; pack params into a single
    # stacked (3, C, 1) operand (one DMA / one padded VMEM tile, not three).
    f_col = (freqs.astype(jnp.float32) * _TWO_PI).reshape(C, 1)
    p_col = (phases.astype(jnp.float32) * _TWO_PI).reshape(C, 1)
    w_col = weight.astype(jnp.float32).reshape(C, 1)
    params = jnp.stack([f_col, p_col, w_col], axis=0)              # (3, C, 1) f32
    b_sc = bias.astype(jnp.float32).reshape(1, 1)

    # Lane-dense (1, B) view of t in its NATIVE dtype (cast happens in-kernel).
    t_row = t.reshape(1, B)

    if B <= small_b_threshold:
        # Fixed-cost-dominated regime: single invocation, no grid machinery.
        out_row = pl.pallas_call(
            _logvar_kernel_whole,
            out_shape=jax.ShapeDtypeStruct((1, B), out_dtype),
            in_specs=[
                pl.BlockSpec(memory_space=pltpu.MemorySpace.VMEM),   # t
                pl.BlockSpec(memory_space=pltpu.MemorySpace.VMEM),   # packed params
                pl.BlockSpec(memory_space=pltpu.MemorySpace.SMEM),   # bias
            ],
            out_specs=pl.BlockSpec(memory_space=pltpu.MemorySpace.VMEM),
        )(t_row, params, b_sc)
    else:
        # Even number of blocks (>= 2) so "parallel" shards across v7x's 2 TCs;
        # each block near max_block_b lanes to amortize per-step overhead.
        num_blocks = max(2, 2 * _ceil_div(B, 2 * max_block_b))
        block_b = _ceil_div(_ceil_div(B, num_blocks), 128) * 128
        chunk = next(c for c in (1024, 512, 256, 128) if block_b % c == 0)
        num_chunks = block_b // chunk
        grid = (pl.cdiv(B, block_b),)

        kernel = functools.partial(_logvar_kernel_tiled,
                                   chunk=chunk, num_chunks=num_chunks)
        out_row = pl.pallas_call(
            kernel,
            out_shape=jax.ShapeDtypeStruct((1, B), out_dtype),
            grid=grid,
            in_specs=[
                pl.BlockSpec((1, block_b), lambda i: (0, i)),        # t tiles
                pl.BlockSpec((3, C, 1), lambda i: (0, 0, 0)),        # params (resident)
                pl.BlockSpec((1, 1), lambda i: (0, 0),
                             memory_space=pltpu.MemorySpace.SMEM),   # bias scalar
            ],
            out_specs=pl.BlockSpec((1, block_b), lambda i: (0, i)),
            compiler_params=pltpu.CompilerParams(
                dimension_semantics=("parallel",)),
        )(t_row, params, b_sc)

    return out_row.reshape(B, 1)


def reference(t, freqs, phases, weight, bias):
    t32 = t.astype(jnp.float32)
    emb = jnp.cos((freqs * t32[:, None] + phases) * (2.0 * np.pi))
    return (emb @ weight.T + bias).astype(t.dtype)


if __name__ == "__main__":
    key = jax.random.PRNGKey(0)
    k_t, k_f, k_p, k_w, k_b, k_t2 = jax.random.split(key, 6)

    B = 8     # batch of timesteps
    C = 32    # channels_freq

    # Deterministic synthetic parameters (matching torch init shapes).
    freqs = jax.random.normal(k_f, (1, C), dtype=jnp.float32)          # randn
    phases = jax.random.uniform(k_p, (1, C), dtype=jnp.float32)        # rand
    bound = 1.0 / np.sqrt(C)
    weight = jax.random.uniform(k_w, (1, C), minval=-bound, maxval=bound,
                                dtype=jnp.float32)                     # Linear w
    bias = jax.random.uniform(k_b, (1,), minval=-bound, maxval=bound,
                              dtype=jnp.float32)                       # Linear b

    # Small-batch path (no grid).
    t_small = jax.random.uniform(k_t, (B,), dtype=jnp.float32)
    out_small = jax.block_until_ready(
        logvar_net(t_small, freqs, phases, weight, bias))
    np.testing.assert_allclose(
        np.asarray(out_small),
        np.asarray(reference(t_small, freqs, phases, weight, bias)),
        rtol=1e-5, atol=5e-5)

    # Larger-batch tiled path (lane-dense blocks, even "parallel" grid,
    # non-divisible B exercises the pad-free boundary-block handling).
    B_big = 1000
    t_big = jax.random.uniform(k_t2, (B_big,), dtype=jnp.float32)
    out_big = jax.block_until_ready(
        logvar_net(t_big, freqs, phases, weight, bias))
    np.testing.assert_allclose(
        np.asarray(out_big),
        np.asarray(reference(t_big, freqs, phases, weight, bias)),
        rtol=1e-5, atol=5e-5)

    print("KERNEL_OK")
</pallas_src>

<mosaic_0001>
module attributes {stable_mosaic.version = 11 : i64} {
  func.func @_logvar_kernel_whole(%arg0: memref<1x8xf32, #tpu.memory_space<vmem>>, %arg1: memref<3x32x1xf32, #tpu.memory_space<vmem>>, %arg2: memref<1x1xf32, #tpu.memory_space<smem>>, %arg3: memref<1x8xf32, #tpu.memory_space<vmem>>) attributes {dimension_semantics = [], scalar_prefetch = 0 : i64, scratch_operands = 0 : i64, tpu.core_type = #tpu.core_type<tc>} {
    %c0 = arith.constant 0 : index
    %c0_0 = arith.constant 0 : index
    %0 = vector.load %arg0[%c0, %c0_0] : memref<1x8xf32, #tpu.memory_space<vmem>>, vector<1x8xf32>
    %c0_1 = arith.constant 0 : index
    %c0_2 = arith.constant 0 : index
    %c0_3 = arith.constant 0 : index
    %1 = vector.load %arg1[%c0_1, %c0_2, %c0_3] : memref<3x32x1xf32, #tpu.memory_space<vmem>>, vector<1x32x1xf32>
    %2 = vector.shape_cast %1 : vector<1x32x1xf32> to vector<32x1xf32>
    %c1 = arith.constant 1 : index
    %c0_4 = arith.constant 0 : index
    %c0_5 = arith.constant 0 : index
    %3 = vector.load %arg1[%c1, %c0_4, %c0_5] : memref<3x32x1xf32, #tpu.memory_space<vmem>>, vector<1x32x1xf32>
    %4 = vector.shape_cast %3 : vector<1x32x1xf32> to vector<32x1xf32>
    %c2 = arith.constant 2 : index
    %c0_6 = arith.constant 0 : index
    %c0_7 = arith.constant 0 : index
    %5 = vector.load %arg1[%c2, %c0_6, %c0_7] : memref<3x32x1xf32, #tpu.memory_space<vmem>>, vector<1x32x1xf32>
    %6 = vector.shape_cast %5 : vector<1x32x1xf32> to vector<32x1xf32>
    %7 = vector.broadcast %2 : vector<32x1xf32> to vector<32x8xf32>
    %8 = vector.broadcast %0 : vector<1x8xf32> to vector<32x8xf32>
    %9 = arith.mulf %7, %8 : vector<32x8xf32>
    %10 = vector.broadcast %4 : vector<32x1xf32> to vector<32x8xf32>
    %11 = arith.addf %9, %10 : vector<32x8xf32>
    %12 = math.cos %11 : vector<32x8xf32>
    %13 = vector.broadcast %6 : vector<32x1xf32> to vector<32x8xf32>
    %14 = arith.mulf %12, %13 : vector<32x8xf32>
    %cst = arith.constant dense<0.000000e+00> : vector<8xf32>
    %15 = vector.multi_reduction <add>, %14, %cst [0] : vector<32x8xf32> to vector<8xf32>
    %16 = vector.shape_cast %15 : vector<8xf32> to vector<1x8xf32>
    %c0_8 = arith.constant 0 : index
    %c0_9 = arith.constant 0 : index
    %17 = memref.load %arg2[%c0_8, %c0_9] : memref<1x1xf32, #tpu.memory_space<smem>>
    %18 = vector.broadcast %17 : f32 to vector<1x8xf32>
    %19 = arith.addf %16, %18 : vector<1x8xf32>
    %c0_10 = arith.constant 0 : index
    %c0_11 = arith.constant 0 : index
    %20 = vector.load %arg3[%c0_10, %c0_11] : memref<1x8xf32, #tpu.memory_space<vmem>>, vector<1x8xf32>
    tpu.vector_store %arg3[%c0_10, %c0_11], %19 {strides = array<i32>} : memref<1x8xf32, #tpu.memory_space<vmem>>, vector<1x8xf32>,
    return
  }
}

</mosaic_0001>

<bundles_post_ra>
// kernel: tpu_custom_call.1
= control target key start
LH: loop header
LB: loop body
LE: loop exit
PB: predicated region body
PF: predicated region fallthrough
CT: control target
= control target key end

     0   :  { %v643_v2 = vmov 0   ;;  %s1064_s0 = inlined_call_operand.vmem [shape: f32[1,8], index: 0, kind: input, shape index: {}]   ;;  %s1065_s1 = inlined_call_operand.vmem [shape: f32[3,32,1], index: 1, kind: input, shape index: {}]   ;;  %s1066_s2 = inlined_call_operand.<no memory space> [shape: f32[1,1], index: 2, kind: input, shape index: {}]   ;;  %s1067_s3 = inlined_call_operand.hbm [shape: f32[1,8], index: 3, kind: output, shape index: {}]  }
   0x1   :  { %v19_v0 = vld [vmem:[%s1065_s1 + $0x10] sm:$0xff]  ;;  %v17_v1 = vld [vmem:[%s1065_s1] sm:$0xff]  ;;  %604 = vset.pattern.permute.xlu1 %v643_v2  ;;  %603 = vset.pattern.permute.xlu0 %v643_v2  ;;  %v18_v4 = vld [vmem:[%s1065_s1 + $0x8] sm:$0xff] }
   0x2   :  { %43 = vperm.xlu1 %604, %v19_v0   ;;  %33 = vperm.xlu0 %603, %v17_v1   ;;  %v554_v3 = vld [vmem:[%s1065_s1 + $0x20] sm:$0xff] }
   0x3   :  { %9 = vsyncpa [#allocation4], 0  ;;  %v20_v5 = vld [vmem:[%s1065_s1 + $0x18] sm:$0xff]  ;;  %v555_v6 = vld [vmem:[%s1065_s1 + $0x28] sm:$0xff]  ;;  %v644_v54 = vmov 920167782  }
   0x4   :  { %v557_v7 = vld [vmem:[%s1065_s1 + $0x38] sm:$0xff]  ;;  %v556_v8 = vld [vmem:[%s1065_s1 + $0x30] sm:$0xff]  ;;  %v559_v9 = vld [vmem:[%s1065_s1 + $0x48] sm:$0xff]  ;;  %v645_v58 = vmov 1326507024   ;;  %s650_s11 = smov [#allocation3]  }
   0x5   :  { %v558_v10 = vld [vmem:[%s1065_s1 + $0x40] sm:$0xff]  ;;  %v561_v11 = vld [vmem:[%s1065_s1 + $0x58] sm:$0xff]  ;;  %v560_v12 = vld [vmem:[%s1065_s1 + $0x50] sm:$0xff]  ;;  %v646_v62 = vmov 2102212464   ;;  %s546_s12 = sshll.u32 %s650_s11, 4  ;;  %s547_s12 = int_to_ptr.vmem [resolvable:$true] %s546_s12 }
   0x6   :  { %63 = vperm.xlu1 %604, %v554_v3   ;;  %38 = vperm.xlu0 %603, %v18_v4   ;;  %v562_v14 = vld [vmem:[%s1064_s0] ss:$0 sm:$0xff]  ;;  %s621_s13 = scalar_lea.vmem %s547_s12, 16  ;;  %s625_s14 = scalar_lea.vmem %s547_s12, 32 }
   0x7   :  { %p622_p0 = scmp.ne.s32.totalorder %s547_s12, %s621_s13  ;;  %p626_p1 = scmp.lt.s32.totalorder %s547_s12, %s547_s12 }
   0x8   :  { %p627_p2 = scmp.lt.s32.totalorder %s625_s14, %s621_s13 }
   0xa   :  { %48 = vperm.xlu1 %604, %v20_v5   ;;  %68 = vperm.xlu0 %603, %v555_v6   ;;  %p628_p3 = por %p627_p2, %p626_p1 }
   0xc   :  { %p629_p4 = pnand %p628_p3, %p622_p0 }
   0xe   :  { %78 = vperm.xlu1 %604, %v557_v7   ;;  %73 = vperm.xlu0 %603, %v556_v8  }
  0x12   :  { %504 = vperm.xlu1 %604, %v559_v9   ;;  %499 = vperm.xlu0 %603, %v558_v10  }
  0x16   :  { %514 = vperm.xlu1 %604, %v561_v11   ;;  %509 = vperm.xlu0 %603, %v560_v12  }
  0x7d   :  { %v44_v13 = vpop.permute.xlu1 %43  ;;  %v34_v15 = vpop.permute.xlu0 %33 }
  0x7e   :  { %v57_v16 = vmul.f32 %v562_v14, %v34_v15  ;;  %v59_v29 = vmul.f32 %v562_v14, %v44_v13 }
  0x81   :  { %v64_v17 = vpop.permute.xlu1 %63  ;;  %v39_v18 = vpop.permute.xlu0 %38 }
  0x82   :  { %v710_v19 = vadd.f32 %v64_v17, %v57_v16  ;;  %v58_v21 = vmul.f32 %v562_v14, %v39_v18  ;;  %v648_v18 = vmov 2475754826  }
  0x84   :  { %v88_v20 = vand.u32 2139095040, %v710_v19  ;;  %v85_v35 = vand.u32 2147483647, %v710_v19 }
  0x85   :  { %v49_v22 = vpop.permute.xlu1 %48  ;;  %v69_v23 = vpop.permute.xlu0 %68 }
  0x86   :  { %v89_v24 = vshrl.u32 %v88_v20, 23  ;;  %v713_v25 = vadd.f32 %v69_v23, %v58_v21  ;;  %v60_v27 = vmul.f32 %v562_v14, %v49_v22  ;;  %v92_v44 = vand.u32 8388607, %v85_v35 }
  0x87   :  { %v647_v14 = vmov 683565275  }
  0x88   :  { %v563_v26 = vadd.s32 4294967169, %v89_v24  ;;  %v191_v28 = vand.u32 2139095040, %v713_v25  ;;  %v188_v39 = vand.u32 2147483647, %v713_v25  ;;  %v93_v50 = vor.u32 8388608, %v92_v44 }
  0x89   :  { %v79_v30 = vpop.permute.xlu1 %78  ;;  %v74_v31 = vpop.permute.xlu0 %73 }
  0x8a   :  { %v95_v32 = vadd.s32 1, %v563_v26  ;;  %v192_v33 = vshrl.u32 %v191_v28, 23  ;;  %v716_v34 = vadd.f32 %v79_v30, %v60_v27  ;;  %v719_v36 = vadd.f32 %v74_v31, %v59_v29 }
  0x8b   :  { %v195_v47 = vand.u32 8388607, %v188_v39  ;;  %v742_v0 = vshll.u32 %v93_v50, 8 }
  0x8c   :  { %vm96_vm0 = vcmp.gt.s32.totalorder %v95_v32, 0  ;;  %v567_v37 = vadd.s32 4294967169, %v192_v33  ;;  %v397_v38 = vand.u32 2139095040, %v716_v34  ;;  %v294_v45 = vand.u32 2139095040, %v719_v36 }
  0x8d   :  { %v97_v40 = vsel %vm96_vm0, %v95_v32, 0  ;;  %v196_v56 = vor.u32 8388608, %v195_v47  ;;  %v394_v61 = vand.u32 2147483647, %v716_v34 }
  0x8e   :  { %v723_v41 = vand.u32 31, %v97_v40  ;;  %v198_v42 = vadd.s32 1, %v567_v37  ;;  %v398_v43 = vshrl.u32 %v397_v38, 23  ;;  %v295_v53 = vshrl.u32 %v294_v45, 23 }
  0x8f   :  { %v735_v57 = vshrl.u32 %v97_v40, 5  ;;  %v753_v10 = vshll.u32 %v196_v56, 8  ;;  %v757_v11 = vand.u32 8388607, %v394_v61  ;;  %v649_v37 = vmov 2131351028  }
  0x90   :  { %v729_v46 = vsub.s32 32, %v723_v41  ;;  %vm199_vm1 = vcmp.gt.s32.totalorder %v198_v42, 0  ;;  %v575_v48 = vadd.s32 4294967169, %v398_v43  ;;  %v111_v63 = vshll.u32 %v646_v62, %v723_v41 }
  0x91   :  { %v200_v49 = vsel %vm199_vm1, %v198_v42, 0  ;;  %v114_v1 = vshll.u32 %v644_v54, %v723_v41  ;;  %v571_v4 = vadd.s32 4294967169, %v295_v53  ;;  %vm120_vm3 = vcmp.lt.s32.totalorder %v735_v57, 4 }
  0x92   :  { %v202_v51 = vand.u32 31, %v200_v49  ;;  %v404_v52 = vadd.s32 1, %v575_v48  ;;  %v112_v55 = vshrl.u32 %v644_v54, %v729_v46  ;;  %v115_v59 = vshrl.u32 %v645_v58, %v729_v46 }
  0x93   :  { %v201_v2 = vshrl.u32 %v200_v49, 5  ;;  %v101_v15 = vshrl.u32 %v647_v14, %v729_v46  ;;  %v102_v16 = vshll.u32 %v647_v14, %v723_v41  ;;  %v765_v17 = vadd.s32 1, %v571_v4 }
  0x94   :  { %v203_v60 = vsub.s32 32, %v202_v51  ;;  %vm405_vm2 = vcmp.gt.s32.totalorder %v404_v52, 0  ;;  %v746_v5 = vor.u32 %v112_v55, %v111_v63  ;;  %v116_v9 = vor.u32 %v115_v59, %v114_v1 }
  0x95   :  { %v406_v3 = vsel %vm405_vm2, %v404_v52, 0  ;;  %v214_v12 = vshll.u32 %v646_v62, %v202_v51  ;;  %v217_v13 = vshll.u32 %v644_v54, %v202_v51  ;;  %vm223_vm4 = vcmp.lt.s32.totalorder %v201_v2, 4 }
  0x96   :  { %v215_v6 = vshrl.u32 %v644_v54, %v203_v60  ;;  %v218_v7 = vshrl.u32 %v645_v58, %v203_v60  ;;  %v750_v8 = vand.u32 31, %v406_v3  ;;  %v103_v20 = vshrl.u32 %v648_v18, %v729_v46 }
  0x97   :  { %v105_v21 = vshll.u32 %v648_v18, %v723_v41  ;;  %v774_v22 = vsel %vm120_vm3, %v746_v5, 920167782  ;;  %v130_v27 = vsel %vm120_vm3, %v116_v9, 1326507024  ;;  %v781_v28 = vshrl.u32 %v406_v3, 5 }
  0x98   :  { %v216_v23 = vor.u32 %v215_v6, %v214_v12  ;;  %v219_v24 = vor.u32 %v218_v7, %v217_v13  ;;  %v777_v26 = vsub.s32 32, %v750_v8  ;;  %v205_v29 = vshll.u32 %v647_v14, %v202_v51 }
  0x99   :  { %v206_v30 = vshrl.u32 %v648_v18, %v203_v60  ;;  %v420_v31 = vshll.u32 %v646_v62, %v750_v8  ;;  %v204_v32 = vshrl.u32 %v647_v14, %v203_v60  ;;  %v208_v33 = vshll.u32 %v648_v18, %v202_v51 }
  0x9a   :  { %v209_v38 = vshrl.u32 %v649_v37, %v203_v60  ;;  %v792_v40 = vshll.u32 %v644_v54, %v750_v8  ;;  %v211_v43 = vshll.u32 %v649_v37, %v202_v51  ;;  %v212_v44 = vshrl.u32 %v646_v62, %v203_v60 }
  0x9b   :  { %v207_v42 = vor.u32 %v206_v30, %v205_v29  ;;  %v229_v45 = vsel %vm223_vm4, %v216_v23, 920167782  ;;  %v233_v47 = vsel %vm223_vm4, %v219_v24, 1326507024  ;;  %v421_v48 = vshrl.u32 %v644_v54, %v777_v26 }
  0x9c   :  { %v210_v49 = vor.u32 %v209_v38, %v208_v33  ;;  %v424_v50 = vshrl.u32 %v645_v58, %v777_v26  ;;  %v213_v52 = vor.u32 %v212_v44, %v211_v43  ;;  %vm220_vm5 = vcmp.lt.s32.totalorder %v201_v2, 1 }
  0x9d   :  { %vm221_vm6 = vcmp.lt.s32.totalorder %v201_v2, 2  ;;  %vm222_vm7 = vcmp.lt.s32.totalorder %v201_v2, 3  ;;  %v224_v53 = vsel %vm220_vm5, %v204_v32, %v207_v42  ;;  %v104_v51 = vor.u32 %v103_v20, %v102_v16 }
  0x9e   :  { %v228_v55 = vsel %vm220_vm5, %v207_v42, %v210_v49  ;;  %v225_v56 = vsel %vm223_vm4, %v213_v52, 2102212464  ;;  %v230_v59 = vsel %vm222_vm7, %v213_v52, %v229_v45  ;;  %v232_v60 = vsel %vm220_vm5, %v210_v49, %v213_v52 }
  0x9f   :  { %v234_v63 = vsel %vm222_vm7, %v216_v23, %v233_v47  ;;  %v226_v1 = vsel %vm222_vm7, %v210_v49, %v225_v56  ;;  %v231_v3 = vsel %vm221_vm6, %v228_v55, %v230_v59  ;;  %v106_v6 = vshrl.u32 %v649_v37, %v729_v46 }
  0xa0   :  { %v235_v4 = vsel %vm221_vm6, %v232_v60, %v234_v63  ;;  %vm429_vm8 = vcmp.lt.s32.totalorder %v781_v28, 4  ;;  %v227_v7 = vsel %vm221_vm6, %v224_v53, %v226_v1  ;;  %v422_v13 = vor.u32 %v421_v48, %v420_v31 }
  0xa1   :  { %v807_v9 = vmul.u32.u64.low %v753_v10, %v235_v4  ;;  %v808_v12 = vmul.u32.u64.high %v753_v10, %v235_v4, %v807_v9  ;;  %v811_v2 = vmul.u32.u64.low %v753_v10, %v231_v3  ;;  %v812_v16 = vmul.u32.u64.high %v753_v10, %v231_v3, %v811_v2 }
  0xa2   :  { %v107_v20 = vor.u32 %v106_v6, %v105_v21  ;;  %v425_v23 = vor.u32 %v424_v50, %v792_v40  ;;  %v108_v24 = vshll.u32 %v649_v37, %v723_v41  ;;  %v109_v29 = vshrl.u32 %v646_v62, %v729_v46 }
  0xa3   :  { %vm117_vm9 = vcmp.lt.s32.totalorder %v735_v57, 1  ;;  %v243_v30 = vmul.u32 %v753_v10, %v227_v7  ;;  %vm118_vm10 = vcmp.lt.s32.totalorder %v735_v57, 2  ;;  %vm119_vm11 = vcmp.lt.s32.totalorder %v735_v57, 3 }
  0xa4   :  { %v121_v31 = vsel %vm117_vm9, %v101_v15, %v104_v51  ;;  %vm245_vm12 = vc.u32 %v808_v12, %v811_v2  ;;  %v110_v21 = vor.u32 %v109_v29, %v108_v24  ;;  %v125_v41 = vsel %vm117_vm9, %v104_v51, %v107_v20 }
  0xa5   :  { %v131_v46 = vsel %vm119_vm11, %v746_v5, %v130_v27  ;;  %v246_v10 = vadd.s32 1, %v812_v16  ;;  %v411_v32 = vshll.u32 %v647_v14, %v750_v8  ;;  %v412_v33 = vshrl.u32 %v648_v18, %v777_v26 }
  0xa6   :  { %v414_v15 = vshll.u32 %v648_v18, %v750_v8  ;;  %v122_v38 = vsel %vm120_vm3, %v110_v21, 2102212464  ;;  %v127_v40 = vsel %vm119_vm11, %v110_v21, %v774_v22  ;;  %v129_v5 = vsel %vm117_vm9, %v107_v20, %v110_v21 }
  0xa7   :  { %v415_v27 = vshrl.u32 %v649_v37, %v777_v26  ;;  %vm302_vm13 = vcmp.gt.s32.totalorder %v765_v17, 0  ;;  %v247_v42 = vsel %vm245_vm12, %v246_v10, %v812_v16  ;;  %v123_v43 = vsel %vm119_vm11, %v107_v20, %v122_v38 }
  0xa8   :  { %v128_v44 = vsel %vm118_vm10, %v125_v41, %v127_v40  ;;  %v132_v45 = vsel %vm118_vm10, %v129_v5, %v131_v46  ;;  %v248_v22 = vadd.s32 %v247_v42, %v243_v30  ;;  %v124_v47 = vsel %vm118_vm10, %v121_v31, %v123_v43 }
  0xa9   :  { %v860_v48 = vmul.u32.u64.low %v742_v0, %v132_v45  ;;  %v861_v49 = vmul.u32.u64.high %v742_v0, %v132_v45, %v860_v48  ;;  %v435_v50 = vsel %vm429_vm8, %v422_v13, 920167782  ;;  %v413_v55 = vor.u32 %v412_v33, %v411_v32 }
  0xaa   :  { %v866_v52 = vmul.u32.u64.low %v742_v0, %v128_v44  ;;  %v867_v53 = vmul.u32.u64.high %v742_v0, %v128_v44, %v866_v52  ;;  %v249_v51 = vadd.s32 536870912, %v248_v22  ;;  %v416_v56 = vor.u32 %v415_v27, %v414_v15 }
  0xab   :  { %v417_v59 = vshll.u32 %v649_v37, %v750_v8  ;;  %v418_v57 = vshrl.u32 %v646_v62, %v777_v26  ;;  %v439_v60 = vsel %vm429_vm8, %v425_v23, 1326507024  ;;  %v140_v63 = vmul.u32 %v742_v0, %v124_v47 }
  0xac   :  { %v402_v1 = vor.u32 8388608, %v757_v11  ;;  %v410_v3 = vshrl.u32 %v647_v14, %v777_v26  ;;  %v880_v4 = vshrl.u32 %v249_v51, 30  ;;  %vm142_vm14 = vc.u32 %v861_v49, %v866_v52 }
  0xad   :  { %v419_v6 = vor.u32 %v418_v57, %v417_v59  ;;  %vm426_vm15 = vcmp.lt.s32.totalorder %v781_v28, 1  ;;  %v143_v8 = vadd.s32 1, %v867_v53  ;;  %vm427_vm0 = vcmp.lt.s32.totalorder %v781_v28, 2 }
  0xae   :  { %vm428_vm1 = vcmp.lt.s32.totalorder %v781_v28, 3  ;;  %v434_v0 = vsel %vm426_vm15, %v413_v55, %v416_v56  ;;  %v251_v11 = vshll.u32 %v880_v4, 30  ;;  %v442_v24 = vshll.u32 %v402_v1, 8 }
  0xaf   :  { %v431_v26 = vsel %vm429_vm8, %v419_v6, 2102212464  ;;  %v436_v7 = vsel %vm428_vm1, %v419_v6, %v435_v50  ;;  %v440_v9 = vsel %vm428_vm1, %v422_v13, %v439_v60  ;;  %v144_v16 = vsel %vm142_vm14, %v143_v8, %v867_v53 }
  0xb0   :  { %v437_v20 = vsel %vm427_vm0, %v434_v0, %v436_v7  ;;  %v438_v23 = vsel %vm426_vm15, %v416_v56, %v419_v6  ;;  %v894_v29 = vsub.s32 %v248_v22, %v251_v11  ;;  %v145_v30 = vadd.s32 %v144_v16, %v140_v63 }
  0xb1   :  { %v430_v31 = vsel %vm426_vm15, %v410_v3, %v413_v55  ;;  %v432_v21 = vsel %vm428_vm1, %v416_v56, %v431_v26  ;;  %v441_v41 = vsel %vm427_vm0, %v438_v23, %v440_v9  ;;  %v303_v13 = vsel %vm302_vm13, %v765_v17, 0 }
  0xb2   :  { %v898_v46 = vmul.u32.u64.low %v442_v24, %v437_v20  ;;  %v899_v10 = vmul.u32.u64.high %v442_v24, %v437_v20, %v898_v46  ;;  %v254_v32 = vsub.s32 0, %v894_v29  ;;  %v146_v33 = vadd.s32 536870912, %v145_v30 }
  0xb3   :  { %v906_v15 = vmul.u32.u64.low %v442_v24, %v441_v41  ;;  %v907_v38 = vmul.u32.u64.high %v442_v24, %v441_v41, %v906_v15  ;;  %v433_v5 = vsel %vm427_vm0, %v430_v31, %v432_v21  ;;  %v305_v27 = vand.u32 31, %v303_v13 }
  0xb4   :  { %v568_v40 = vmin.u32 %v254_v32, %v894_v29  ;;  %v912_v42 = vshrl.u32 %v146_v33, 30  ;;  %v452_v43 = vadd.s32 1, %v899_v10  ;;  %v449_v45 = vmul.u32 %v442_v24, %v433_v5 }
  0xb5   :  { %vm451_vm2 = vc.u32 %v907_v38, %v898_v46  ;;  %v306_v47 = vsub.s32 32, %v305_v27  ;;  %v291_v60 = vand.u32 2147483647, %v719_v36  ;;  %v304_v63 = vshrl.u32 %v303_v13, 5 }
  0xb6   :  { %v148_v44 = vshll.u32 %v912_v42, 30  ;;  %v256_v17 = vclz %v568_v40  ;;  %v453_v22 = vsel %vm451_vm2, %v452_v43, %v899_v10  ;;  %v317_v1 = vshll.u32 %v646_v62, %v305_v27 }
  0xb7   :  { %v454_v50 = vadd.s32 %v453_v22, %v449_v45  ;;  %v318_v51 = vshrl.u32 %v644_v54, %v306_v47  ;;  %v321_v56 = vshrl.u32 %v645_v58, %v306_v47  ;;  %v320_v3 = vshll.u32 %v644_v54, %v305_v27 }
  0xb8   :  { %v919_v48 = vsub.s32 %v145_v30, %v148_v44  ;;  %v569_v55 = vadd.s32 4294967294, %v256_v17  ;;  %v312_v0 = vshrl.u32 %v649_v37, %v306_v47  ;;  %v315_v11 = vshrl.u32 %v646_v62, %v306_v47 }
  0xb9   :  { %v455_v53 = vadd.s32 536870912, %v454_v50  ;;  %v319_v58 = vor.u32 %v318_v51, %v317_v1  ;;  %v322_v26 = vor.u32 %v321_v56, %v320_v3  ;;  %v309_v9 = vshrl.u32 %v648_v18, %v306_v47 }
  0xba   :  { %v151_v28 = vsub.s32 0, %v919_v48  ;;  %vm570_vm3 = vcmp.lt.s32.totalorder %v569_v55, 0  ;;  %v298_v20 = vand.u32 8388607, %v291_v60  ;;  %v311_v54 = vshll.u32 %v648_v18, %v305_v27 }
  0xbb   :  { %v925_v57 = vshrl.u32 %v455_v53, 30  ;;  %v314_v23 = vshll.u32 %v649_v37, %v305_v27  ;;  %v259_v24 = vsel %vm570_vm3, 0, %v569_v55  ;;  %v308_v30 = vshll.u32 %v647_v14, %v305_v27 }
  0xbc   :  { %v564_v59 = vmin.u32 %v151_v28, %v919_v48  ;;  %v313_v31 = vor.u32 %v312_v0, %v311_v54  ;;  %vm326_vm5 = vcmp.lt.s32.totalorder %v304_v63, 4  ;;  %v299_v33 = vor.u32 8388608, %v298_v20 }
  0xbd   :  { %v457_v8 = vshll.u32 %v925_v57, 30  ;;  %v316_v21 = vor.u32 %v315_v11, %v314_v23  ;;  %v310_v41 = vor.u32 %v309_v9, %v308_v30  ;;  %v332_v10 = vsel %vm326_vm5, %v319_v58, 920167782 }
  0xbe   :  { %v153_v6 = vclz %v564_v59  ;;  %v336_v13 = vsel %vm326_vm5, %v322_v26, 1326507024  ;;  %v264_v18 = vsub.s32 4294967266, %v259_v24  ;;  %vm323_vm6 = vcmp.lt.s32.totalorder %v304_v63, 1 }
  0xbf   :  { %v934_v16 = vsub.s32 %v454_v50, %v457_v8  ;;  %vm325_vm7 = vcmp.lt.s32.totalorder %v304_v63, 3  ;;  %v335_v40 = vsel %vm323_vm6, %v313_v31, %v316_v21  ;;  %vm324_vm8 = vcmp.lt.s32.totalorder %v304_v63, 2 }
  0xc0   :  { %v565_v7 = vadd.s32 4294967294, %v153_v6  ;;  %v331_v5 = vsel %vm323_vm6, %v310_v41, %v313_v31  ;;  %v333_v27 = vsel %vm325_vm7, %v316_v21, %v332_v10  ;;  %v337_v43 = vsel %vm325_vm7, %v319_v58, %v336_v13 }
  0xc1   :  { %v460_v62 = vsub.s32 0, %v934_v16  ;;  %v338_v17 = vsel %vm324_vm8, %v335_v40, %v337_v43  ;;  %v339_v22 = vshll.u32 %v299_v33, 8  ;;  %v265_v50 = vadd.s32 127, %v264_v18 }
  0xc2   :  { %vm566_vm4 = vcmp.lt.s32.totalorder %v565_v7, 0  ;;  %v307_v28 = vshrl.u32 %v647_v14, %v306_v47  ;;  %v328_v53 = vsel %vm326_vm5, %v316_v21, 2102212464  ;;  %v334_v55 = vsel %vm324_vm8, %v331_v5, %v333_v27 }
  0xc3   :  { %v576_v32 = vmin.u32 %v460_v62, %v934_v16  ;;  %v156_v15 = vsel %vm566_vm4, 0, %v565_v7  ;;  %v953_v51 = vmul.u32.u64.low %v339_v22, %v338_v17  ;;  %v954_v56 = vmul.u32.u64.high %v339_v22, %v338_v17, %v953_v51 }
  0xc4   :  { %v161_v44 = vsub.s32 4294967266, %v156_v15  ;;  %v260_v59 = vsub.s32 32, %v259_v24  ;;  %v327_v8 = vsel %vm323_vm6, %v307_v28, %v310_v41  ;;  %v329_v0 = vsel %vm325_vm7, %v313_v31, %v328_v53 }
  0xc5   :  { %v462_v37 = vclz %v576_v32  ;;  %v244_v11 = vadd.s32 %v811_v2, %v808_v12  ;;  %v266_v14 = vshll.u32 %v265_v50, 23  ;;  %v157_v26 = vsub.s32 32, %v156_v15 }
  0xc6   :  { %v162_v3 = vadd.s32 127, %v161_v44  ;;  %v960_v47 = vmul.u32.u64.low %v339_v22, %v334_v55  ;;  %v961_v58 = vmul.u32.u64.high %v339_v22, %v334_v55, %v960_v47  ;;  %v330_v9 = vsel %vm324_vm8, %v327_v8, %v329_v0 }
  0xc7   :  { %v577_v45 = vadd.s32 4294967294, %v462_v37  ;;  %v262_v7 = vshrl.u32 %v244_v11, %v260_v59  ;;  %v141_v20 = vadd.s32 %v866_v52, %v861_v49  ;;  %v261_v30 = vshll.u32 %v894_v29, %v259_v24  ;;  %v505_v11 = vpop.permute.xlu1 %504 }
  0xc8   :  { %v163_v54 = vshll.u32 %v162_v3, 23  ;;  %vm348_vm10 = vc.u32 %v954_v56, %v960_v47  ;;  %v267_v62 = vor.u32 4788187, %v266_v14  ;;  %v349_v12 = vadd.s32 1, %v961_v58 }
  0xc9   :  { %vm578_vm9 = vcmp.lt.s32.totalorder %v577_v45, 0  ;;  %v159_v2 = vshrl.u32 %v141_v20, %v157_v26  ;;  %v346_v21 = vmul.u32 %v339_v22, %v330_v9  ;;  %v263_v41 = vor.u32 %v262_v7, %v261_v30 }
  0xca   :  { %v465_v1 = vsel %vm578_vm9, 0, %v577_v45  ;;  %v450_v63 = vadd.s32 %v898_v46, %v907_v38  ;;  %v350_v10 = vsel %vm348_vm10, %v349_v12, %v961_v58  ;;  %v158_v49 = vshll.u32 %v919_v48, %v156_v15 }
  0xcb   :  { %v470_v6 = vsub.s32 4294967266, %v465_v1  ;;  %v466_v31 = vsub.s32 32, %v465_v1  ;;  %v164_v52 = vor.u32 4788187, %v163_v54  ;;  %v351_v32 = vadd.s32 %v350_v10, %v346_v21 }
  0xcc   :  { %v268_v33 = vand.u32 2147483647, %v267_v62  ;;  %v160_v18 = vor.u32 %v159_v2, %v158_v49  ;;  %v270_v37 = vcvt.s32.f32 %v263_v41  ;;  %v467_v5 = vshll.u32 %v934_v16, %v465_v1 }
  0xcd   :  { %v471_v23 = vadd.s32 127, %v470_v6  ;;  %v468_v29 = vshrl.u32 %v450_v63, %v466_v31  ;;  %v352_v24 = vadd.s32 536870912, %v351_v32  ;;  %v165_v40 = vand.u32 2147483647, %v164_v52 }
  0xce   :  { %v271_v44 = vmul.f32 %v270_v37, %v268_v33  ;;  %v167_v46 = vcvt.s32.f32 %v160_v18  ;;  %vm190_vm11 = vcmp.lt.s32.totalorder %v713_v25, 0  ;;  %vm982_vm12 = vcmp.le.f32.partialorder %v188_v39, 0.7853982 }
  0xcf   :  { %v472_v13 = vshll.u32 %v471_v23, 23  ;;  %v974_v43 = vshrl.u32 %v352_v24, 30  ;;  %v469_v38 = vor.u32 %v468_v29, %v467_v5  ;;  %vm87_vm13 = vcmp.lt.s32.totalorder %v710_v19, 0 }
  0xd0   :  { %v168_v48 = vmul.f32 %v167_v46, %v165_v40  ;;  %v272_v22 = vxor.u32 2147483648, %v271_v44  ;;  %vm994_vm14 = vcmp.le.f32.partialorder %v85_v35, 0.7853982  ;;  %vm396_vm0 = vcmp.lt.s32.totalorder %v716_v34, 0 }
  0xd1   :  { %v473_v27 = vor.u32 4788187, %v472_v13  ;;  %v354_v45 = vshll.u32 %v974_v43, 30  ;;  %v476_v50 = vcvt.s32.f32 %v469_v38  ;;  %v347_v26 = vadd.s32 %v960_v47, %v954_v56 }
  0xd2   :  { %v169_v53 = vxor.u32 2147483648, %v168_v48  ;;  %v273_v16 = vsel %vm190_vm11, %v272_v22, %v271_v44  ;;  %vm1007_vm1 = vcmp.le.f32.partialorder %v394_v61, 0.7853982  ;;  %v274_v47 = vsub.s32 4, %v880_v4 }
  0xd3   :  { %v474_v15 = vand.u32 2147483647, %v473_v27  ;;  %v355_v17 = vsub.s32 %v351_v32, %v354_v45  ;;  %v276_v3 = vsel %vm982_vm12, %v713_v25, %v273_v16  ;;  %v171_v61 = vsub.s32 4, %v912_v42 }
  0xd4   :  { %v170_v6 = vsel %vm87_vm13, %v169_v53, %v168_v48  ;;  %605 = vcosq.f32 %v276_v3  ;;  %v275_v21 = vsel %vm190_vm11, %v274_v47, %v880_v4  ;;  %v480_v49 = vsub.s32 4, %v925_v57 }
  0xd5   :  { %v357_v28 = vsub.s32 0, %v355_v17  ;;  %v477_v55 = vmul.f32 %v476_v50, %v474_v15  ;;  %v173_v39 = vsel %vm994_vm14, %v710_v19, %v170_v6  ;;  %607 = vsinq.f32 %v276_v3 }
  0xd6   :  { %609 = vcosq.f32 %v173_v39  ;;  %v172_v10 = vsel %vm87_vm13, %v171_v61, %v912_v42  ;;  %v277_v13 = vsel %vm982_vm12, 0, %v275_v21  ;;  %vm293_vm2 = vcmp.lt.s32.totalorder %v719_v36, 0 }
  0xd7   :  { %v572_v51 = vmin.u32 %v357_v28, %v355_v17  ;;  %v478_v8 = vxor.u32 2147483648, %v477_v55  ;;  %611 = vsinq.f32 %v173_v39  ;;  %vm1028_vm3 = vcmp.le.f32.partialorder %v291_v60, 0.7853982  ;;  %v500_v39 = vpop.permute.xlu0 %499 }
  0xd8   :  { %v174_v42 = vsel %vm994_vm14, 0, %v172_v10  ;;  %v281_v37 = vand.u32 3, %v277_v13  ;;  %v481_v60 = vsel %vm396_vm0, %v480_v49, %v925_v57  ;;  %v377_v27 = vsub.s32 4, %v974_v43 }
  0xd9   :  { %v359_v59 = vclz %v572_v51  ;;  %v479_v58 = vsel %vm396_vm0, %v478_v8, %v477_v55  ;;  %v178_v44 = vand.u32 3, %v174_v42  ;;  %v483_v48 = vsel %vm1007_vm1, 0, %v481_v60 }
  0xda   :  { %v482_v30 = vsel %vm1007_vm1, %v716_v34, %v479_v58  ;;  %vm283_vm4 = vcmp.eq.s32.totalorder %v281_v37, 0  ;;  %vm286_vm5 = vcmp.eq.s32.totalorder %v281_v37, 2  ;;  %v378_v57 = vsel %vm293_vm2, %v377_v27, %v974_v43 }
  0xdb   :  { %v573_v0 = vadd.s32 4294967294, %v359_v59  ;;  %613 = vcosq.f32 %v482_v30  ;;  %vm282_vm6 = vcmp.lt.s32.totalorder %v281_v37, 2  ;;  %vm180_vm7 = vcmp.eq.s32.totalorder %v178_v44, 0 }
  0xdc   :  { %615 = vsinq.f32 %v482_v30  ;;  %vm183_vm8 = vcmp.eq.s32.totalorder %v178_v44, 2  ;;  %v487_v50 = vand.u32 3, %v483_v48  ;;  %v380_v59 = vsel %vm1028_vm3, 0, %v378_v57 }
  0xdd   :  { %vm574_vm15 = vcmp.lt.s32.totalorder %v573_v0, 0  ;;  %vm179_vm9 = vcmp.lt.s32.totalorder %v178_v44, 2  ;;  %vm280_vm10 = vweird.f32 %v713_v25  ;;  %v384_v8 = vand.u32 3, %v380_v59 }
  0xde   :  { %v362_v14 = vsel %vm574_vm15, 0, %v573_v0  ;;  %vm489_vm11 = vcmp.eq.s32.totalorder %v487_v50, 0  ;;  %vm492_vm12 = vcmp.eq.s32.totalorder %v487_v50, 2  ;;  %vm177_vm13 = vweird.f32 %v710_v19 }
  0xdf   :  { %v363_v7 = vsub.s32 32, %v362_v14  ;;  %v367_v9 = vsub.s32 4294967266, %v362_v14  ;;  %v364_v20 = vshll.u32 %v355_v17, %v362_v14  ;;  %vm488_vm14 = vcmp.lt.s32.totalorder %v487_v50, 2 }
  0xe0   :  { %vm389_vm15 = vcmp.eq.s32.totalorder %v384_v8, 2  ;;  %vm486_vm0 = vweird.f32 %v716_v34  ;;  %vm386_vm1 = vcmp.eq.s32.totalorder %v384_v8, 0 }
  0xe1   :  { %v365_v54 = vshrl.u32 %v347_v26, %v363_v7  ;;  %v368_v23 = vadd.s32 127, %v367_v9  ;;  %v606_v63 = vpop.eup %605 }
  0xe2   :  { %v608_v32 = vpop.eup %607  ;;  %v287_v5 = vxor.u32 2147483648, %v606_v63 }
  0xe3   :  { %v366_v62 = vor.u32 %v365_v54, %v364_v20  ;;  %v369_v56 = vshll.u32 %v368_v23, 23  ;;  %v610_v18 = vpop.eup %609  ;;  %v284_v40 = vxor.u32 2147483648, %v608_v32 }
  0xe4   :  { %v612_v24 = vpop.eup %611  ;;  %v184_v45 = vxor.u32 2147483648, %v610_v18  ;;  %v288_v22 = vsel %vm286_vm5, %v287_v5, %v608_v32  ;;  %v536_v32 = vstv %s1066_s2  ;;  %vm538_vm5 = vcmask 57344  }
  0xe5   :  { %v370_v12 = vor.u32 4788187, %v369_v56  ;;  %v373_v31 = vcvt.s32.f32 %v366_v62  ;;  %v181_v38 = vxor.u32 2147483648, %v612_v24  ;;  %v285_v17 = vsel %vm283_vm4, %v606_v63, %v284_v40  ;;  %v515_v62 = vpop.permute.xlu1 %514  ;;  %v510_v56 = vpop.permute.xlu0 %509 }
  0xe6   :  { %v185_v53 = vsel %vm183_vm8, %v184_v45, %v612_v24  ;;  %v289_v16 = vsel %vm282_vm6, %v285_v17, %v288_v22  ;;  %vm383_vm4 = vweird.f32 %v719_v36 }
  0xe7   :  { %v371_v2 = vand.u32 2147483647, %v370_v12  ;;  %v182_v28 = vsel %vm180_vm7, %v610_v18, %v181_v38  ;;  %v290_v3 = vsel %vm280_vm10, nan, %v289_v16 }
  0xe8   :  { %v614_v46 = vpop.eup %613  ;;  %v186_v1 = vsel %vm179_vm9, %v182_v28, %v185_v53  ;;  %v518_v26 = vmul.f32 %v505_v11, %v290_v3 }
  0xe9   :  { %v374_v41 = vmul.f32 %v373_v31, %v371_v2  ;;  %v616_v15 = vpop.eup %615  ;;  %v493_v51 = vxor.u32 2147483648, %v614_v46  ;;  %v187_v14 = vsel %vm177_vm13, nan, %v186_v1 }
  0xea   :  { %v490_v55 = vxor.u32 2147483648, %v616_v15  ;;  %v517_v25 = vmul.f32 %v500_v39, %v187_v14 }
  0xeb   :  { %v375_v52 = vxor.u32 2147483648, %v374_v41  ;;  %v494_v6 = vsel %vm492_vm12, %v493_v51, %v616_v15 }
  0xec   :  { %v491_v43 = vsel %vm489_vm11, %v614_v46, %v490_v55 }
  0xed   :  { %v376_v4 = vsel %vm293_vm2, %v375_v52, %v374_v41  ;;  %v495_v7 = vsel %vm488_vm14, %v491_v43, %v494_v6  ;;  %vm521_vm2 = vcmask 64512  }
  0xee   :  { %v379_v29 = vsel %vm1028_vm3, %v719_v36, %v376_v4  ;;  %v496_v54 = vsel %vm486_vm0, nan, %v495_v7  ;;  %vm385_vm3 = vcmp.lt.s32.totalorder %v384_v8, 2  ;;  %v523_v23 = vsel %vm521_vm2, %v518_v26, 0.0 }
  0xef   :  { %617 = vcosq.f32 %v379_v29  ;;  %v522_v12 = vsel %vm521_vm2, %v517_v25, 0.0  ;;  %v520_v61 = vmul.f32 %v515_v62, %v496_v54 }
  0xf0   :  { %619 = vsinq.f32 %v379_v29  ;;  %v524_v31 = vadd.f32 %v523_v23, %v522_v12 }
  0xf1   :  { %v527_v41 = vsel %vm521_vm2, %v520_v61, 0.0 }
  0xfc   :  { %v618_v0 = vpop.eup %617 }
  0xfd   :  { %v620_v58 = vpop.eup %619  ;;  %v390_v9 = vxor.u32 2147483648, %v618_v0 }
  0xfe   :  { %v387_v35 = vxor.u32 2147483648, %v620_v58 }
  0xff   :  { %v391_v20 = vsel %vm389_vm15, %v390_v9, %v620_v58 }
 0x100   :  { %v388_v19 = vsel %vm386_vm1, %v618_v0, %v387_v35 }
 0x101   :  { %v392_v30 = vsel %vm385_vm3, %v388_v19, %v391_v20 }
 0x102   :  { %v393_v47 = vsel %vm383_vm4, nan, %v392_v30 }
 0x103   :  { %v519_v2 = vmul.f32 %v510_v56, %v393_v47 }
 0x105   :  { %v525_v34 = vsel %vm521_vm2, %v519_v2, 0.0 }
 0x106   :  { %v526_v21 = vadd.f32 %v525_v34, %v524_v31 }
 0x108   :  { %v528_v63 = vadd.f32 %v527_v41, %v526_v21 }
 0x10a   :  { %v529_v10 = vrot.slane %v528_v63, 4 }
 0x10c   :  { %v530_v49 = vadd.f32 %v529_v10, %v528_v63 }
 0x10e   :  { %v531_v52 = vrot.slane %v530_v49, 2 }
 0x110   :  { %v532_v13 = vadd.f32 %v531_v52, %v530_v49 }
 0x112   :  { %v533_v36 = vrot.slane %v532_v13, 1 }
 0x114   :  { %v534_v33 = vadd.f32 %v533_v36, %v532_v13 }
 0x116   :  { %v537_v4 = vadd.f32 %v536_v32, %v534_v33 }
 0x118   :  { %539 = vst.msk [vmem:[#allocation3] sm:$0x1] %vm538_vm5, %v537_v4 }
 0x119   :  { %632 = shalt.err (!%p629_p4)
}
 0x11a   :  { %549 = dma.vmem_to_hbm [thread:$0]  %s547_s12, 16, %s1067_s3, [#allocation4]  }
 0x11b   :  { %641 = dma.done.wait [#allocation4], 16  }
 0x11c   :  { %642 = vsyncadd [#allocation4], 4294967280 }
 0x11d   :  { %553 = vsyncpa [#allocation4], 1 }

</bundles_post_ra>
